<compile_context>
chip_gen: v6e
topology: v6e:2x2x1
jax: 0.10.0
libtpu: 0.0.40
codegen_flags: <defaults>
</compile_context>

<pallas_src>
import functools

import jax
import jax.numpy as jnp
import numpy as np
from jax.experimental import pallas as pl
from jax.experimental.pallas import tpu as pltpu


# --------------------------- Pallas kernel ----------------------------------
def _fused_gemm_kernel(*refs, mode):
    """Tiled GEMM with f32 accumulator + fused BN-shift / residual / ReLU."""
    if mode == "plain":
        a_ref, w_ref, shift_ref, o_ref, acc_ref = refs
    elif mode == "residual":
        a_ref, w_ref, shift_ref, res_ref, o_ref, acc_ref = refs
    else:  # "downsample": 1x1-conv residual branch fused into the epilogue
        a_ref, w_ref, shift_ref, xs_ref, wd_ref, o_ref, acc_ref = refs

    k_idx = pl.program_id(2)

    @pl.when(k_idx == 0)
    def _():
        acc_ref[...] = jnp.zeros_like(acc_ref)

    acc_ref[...] += jnp.dot(a_ref[...], w_ref[...],
                            preferred_element_type=jnp.float32)

    @pl.when(k_idx == pl.num_programs(2) - 1)
    def _():
        y = acc_ref[...] + shift_ref[...]
        if mode == "residual":
            y = y + res_ref[...].astype(jnp.float32)
        elif mode == "downsample":
            y = y + jnp.dot(xs_ref[...], wd_ref[...],
                            preferred_element_type=jnp.float32)
        o_ref[...] = jnp.maximum(y, 0.0).astype(o_ref.dtype)


# ----------------------------- tiling helpers --------------------------------
def _round_up(x, m):
    return (x + m - 1) // m * m


def _pick_bm(m_pad):
    # Prefer >=2 row blocks so v7x's 2 TensorCores both get work.
    for bm in (256, 128, 64):
        if m_pad % bm == 0 and m_pad // bm >= 2:
            return bm
    for bm in (256, 128, 64):
        if m_pad % bm == 0:
            return bm
    return m_pad


def _pick_bk(k_pad):
    for bk in (512, 256, 128):
        if k_pad % bk == 0:
            return bk
    return k_pad


def _pad2d(a, m_pad, n_pad):
    m, n = a.shape
    if m == m_pad and n == n_pad:
        return a
    return jnp.pad(a, ((0, m_pad - m), (0, n_pad - n)))


# --------------------------- fused conv-GEMM call ----------------------------
def _fused_conv_gemm(patches, w_folded, shift, *, residual=None,
                     ds_patches=None, ds_w=None, out_dtype=jnp.float32):
    """out = relu( patches @ w_folded + shift [+ residual | + ds @ ds_w] )."""
    m, k = patches.shape
    n = w_folded.shape[1]
    m_pad = _round_up(m, 128)
    k_pad = _round_up(k, 128)
    n_pad = _round_up(n, 128)
    bm, bk, bn = _pick_bm(m_pad), _pick_bk(k_pad), 128

    a = _pad2d(patches.astype(jnp.bfloat16), m_pad, k_pad)
    w = _pad2d(w_folded.astype(jnp.bfloat16), k_pad, n_pad)
    s = _pad2d(shift.reshape(1, n).astype(jnp.float32), 1, n_pad)

    in_specs = [
        pl.BlockSpec((bm, bk), lambda i, j, kk: (i, kk)),   # patches (bf16)
        pl.BlockSpec((bk, bn), lambda i, j, kk: (kk, j)),   # folded weights (bf16)
        pl.BlockSpec((1, bn), lambda i, j, kk: (0, j)),     # bn shift (f32)
    ]
    args = [a, w, s]
    flops = 2 * m_pad * k_pad * n_pad
    bytes_accessed = a.size * 2 + w.size * 2 + s.size * 4 + m_pad * n_pad * 4

    if residual is not None:
        mode = "residual"
        r = _pad2d(residual.astype(jnp.bfloat16), m_pad, n_pad)
        in_specs.append(pl.BlockSpec((bm, bn), lambda i, j, kk: (i, j)))
        args.append(r)
        bytes_accessed += r.size * 2
    elif ds_patches is not None:
        mode = "downsample"
        kd_pad = _round_up(ds_patches.shape[1], 128)
        xs = _pad2d(ds_patches.astype(jnp.bfloat16), m_pad, kd_pad)
        wd = _pad2d(ds_w.astype(jnp.bfloat16), kd_pad, n_pad)
        in_specs += [pl.BlockSpec((bm, kd_pad), lambda i, j, kk: (i, 0)),
                     pl.BlockSpec((kd_pad, bn), lambda i, j, kk: (0, j))]
        args += [xs, wd]
        flops += 2 * m_pad * kd_pad * n_pad
        bytes_accessed += xs.size * 2 + wd.size * 2
    else:
        mode = "plain"

    out = pl.pallas_call(
        functools.partial(_fused_gemm_kernel, mode=mode),
        out_shape=jax.ShapeDtypeStruct((m_pad, n_pad), out_dtype),
        grid=(m_pad // bm, n_pad // bn, k_pad // bk),
        in_specs=in_specs,
        out_specs=pl.BlockSpec((bm, bn), lambda i, j, kk: (i, j)),
        scratch_shapes=[pltpu.VMEM((bm, bn), jnp.float32)],
        compiler_params=pltpu.CompilerParams(
            dimension_semantics=("parallel", "parallel", "arbitrary"),
            vmem_limit_bytes=32 * 1024 * 1024),
        cost_estimate=pl.CostEstimate(flops=int(flops), transcendentals=0,
                                      bytes_accessed=int(bytes_accessed)),
    )(*args)
    return out[:m, :n]


# ------------------------------ JAX glue ------------------------------------
def _im2col(x_nhwc, ksize, stride, padding):
    n, h, w, c = x_nhwc.shape
    xp = jnp.pad(x_nhwc, ((0, 0), (padding, padding), (padding, padding), (0, 0)))
    ho = (h + 2 * padding - ksize) // stride + 1
    wo = (w + 2 * padding - ksize) // stride + 1
    cols = []
    for kh in range(ksize):
        for kw in range(ksize):
            cols.append(xp[:, kh:kh + stride * ho:stride, kw:kw + stride * wo:stride, :])
    patches = jnp.concatenate(cols, axis=-1)          # (n, ho, wo, k*k*c)
    return patches.reshape(n * ho * wo, ksize * ksize * c), (n, ho, wo)


def _fold_bn(gamma, beta, mean, var, eps=1e-5):
    scale = gamma / jnp.sqrt(var + eps)
    shift = beta - mean * scale
    return scale, shift


def _oihw_to_gemm(w_oihw):
    cout, cin, kh, kw = w_oihw.shape
    return jnp.transpose(w_oihw, (2, 3, 1, 0)).reshape(kh * kw * cin, cout)


def basic_block_forward(params, x_nchw, stride):
    x = jnp.transpose(x_nchw, (0, 2, 3, 1)).astype(jnp.bfloat16)   # NCHW -> NHWC
    n, h, w, cin = x.shape
    cout = params["conv1_w"].shape[0]

    # conv1 -> bn1 -> relu   (bn scale folded into weights)
    s1, b1 = _fold_bn(**params["bn1"])
    w1 = _oihw_to_gemm(params["conv1_w"]) * s1[None, :]
    p1, (_, ho, wo) = _im2col(x, 3, stride, 1)
    out1 = _fused_conv_gemm(p1, w1, b1, out_dtype=jnp.bfloat16)    # (N*Ho*Wo, Cout)

    # conv2 -> bn2 -> (+identity / +downsample) -> relu, all in one kernel
    s2, b2 = _fold_bn(**params["bn2"])
    w2 = _oihw_to_gemm(params["conv2_w"]) * s2[None, :]
    p2, _ = _im2col(out1.reshape(n, ho, wo, cout), 3, 1, 1)

    if stride != 1 or cin != cout:
        sd, bd = _fold_bn(**params["bnd"])
        wd = _oihw_to_gemm(params["down_w"]) * sd[None, :]
        xs = x[:, ::stride, ::stride, :].reshape(n * ho * wo, cin)
        out = _fused_conv_gemm(p2, w2, b2 + bd, ds_patches=xs, ds_w=wd)
    else:
        identity = x.reshape(n * h * w, cin)
        out = _fused_conv_gemm(p2, w2, b2, residual=identity)

    return jnp.transpose(out.reshape(n, ho, wo, cout), (0, 3, 1, 2))   # -> NCHW


# ----------------------- params + pure-JAX reference -------------------------
def init_basic_block_params(key, in_channels, out_channels, stride):
    ks = jax.random.split(key, 16)

    def bn(k, c):
        k1, k2, k3, k4 = jax.random.split(k, 4)
        return dict(
            gamma=1.0 + 0.1 * jax.random.normal(k1, (c,), jnp.float32),
            beta=0.1 * jax.random.normal(k2, (c,), jnp.float32),
            mean=0.05 * jax.random.normal(k3, (c,), jnp.float32),
            var=jax.random.uniform(k4, (c,), jnp.float32, 0.5, 1.5),
        )

    p = {
        "conv1_w": 0.1 * jax.random.normal(ks[0], (out_channels, in_channels, 3, 3), jnp.float32),
        "conv2_w": 0.1 * jax.random.normal(ks[1], (out_channels, out_channels, 3, 3), jnp.float32),
        "bn1": bn(ks[2], out_channels),
        "bn2": bn(ks[3], out_channels),
    }
    if stride != 1 or in_channels != out_channels:
        p["down_w"] = 0.1 * jax.random.normal(ks[4], (out_channels, in_channels, 1, 1), jnp.float32)
        p["bnd"] = bn(ks[5], out_channels)
    return p


def reference_forward(params, x_nchw, stride):
    x = jnp.transpose(x_nchw, (0, 2, 3, 1))

    def conv(z, w_oihw, s, pad):
        w_hwio = jnp.transpose(w_oihw, (2, 3, 1, 0))
        return jax.lax.conv_general_dilated(
            z, w_hwio, (s, s), [(pad, pad), (pad, pad)],
            dimension_numbers=("NHWC", "HWIO", "NHWC"))

    def bn(z, p):
        s, b = _fold_bn(**p)
        return z * s + b

    out = jnp.maximum(bn(conv(x, params["conv1_w"], stride, 1), params["bn1"]), 0.0)
    out = bn(conv(out, params["conv2_w"], 1, 1), params["bn2"])
    cin = params["conv1_w"].shape[1]
    cout = params["conv1_w"].shape[0]
    if stride != 1 or cin != cout:
        ident = bn(conv(x, params["down_w"], stride, 0), params["bnd"])
    else:
        ident = x
    return jnp.transpose(jnp.maximum(out + ident, 0.0), (0, 3, 1, 2))


# ---------------------------------- main -------------------------------------
if __name__ == "__main__":
    key = jax.random.PRNGKey(0)
    k_x, k_p = jax.random.split(key)

    in_channels, out_channels, stride = 4, 8, 2
    x = jax.random.normal(k_x, (2, in_channels, 16, 16), jnp.float32)   # NCHW input
    params = init_basic_block_params(k_p, in_channels, out_channels, stride)

    fwd = jax.jit(functools.partial(basic_block_forward, stride=stride))
    out = fwd(params, x)
    jax.block_until_ready(out)

    ref = reference_forward(params, x, stride)
    np.testing.assert_allclose(np.asarray(out, dtype=np.float32), np.asarray(ref),
                               rtol=2e-2, atol=2e-2)

    print("KERNEL_OK")
</pallas_src>

<mosaic_0001>
module attributes {stable_mosaic.version = 11 : i64} {
  func.func @_fused_gemm_kernel(%arg0: i32, %arg1: i32, %arg2: i32, %arg3: memref<64x128xbf16, #tpu.memory_space<vmem>>, %arg4: memref<128x128xbf16, #tpu.memory_space<vmem>>, %arg5: memref<1x128xf32, #tpu.memory_space<vmem>>, %arg6: memref<64x128xbf16, #tpu.memory_space<vmem>>, %arg7: memref<64x128xf32, #tpu.memory_space<vmem>>) attributes {dimension_semantics = [#tpu.dimension_semantics<parallel>, #tpu.dimension_semantics<parallel>, #tpu.dimension_semantics<arbitrary>], iteration_bounds = array<i64: 2, 1, 1>, scalar_prefetch = 0 : i64, scratch_operands = 1 : i64, tpu.core_type = #tpu.core_type<tc>, window_params = [{transform_indices = @transform_0, window_bounds = array<i64: 64, 128>}, {transform_indices = @transform_1, window_bounds = array<i64: 128, 128>}, {transform_indices = @transform_2, window_bounds = array<i64: 1, 128>}, {transform_indices = @transform_3, window_bounds = array<i64: 64, 128>}]} {
    %c0_i32 = arith.constant 0 : i32
    %0 = arith.cmpi eq, %arg2, %c0_i32 : i32
    %1 = arith.extui %0 : i1 to i32
    %c0_i32_0 = arith.constant 0 : i32
    %2 = arith.cmpi ne, %1, %c0_i32_0 : i32
    scf.if %2 {
      %cst_10 = arith.constant 0.000000e+00 : f32
      %12 = vector.broadcast %cst_10 : f32 to vector<64x128xf32>
      %c0_11 = arith.constant 0 : index
      %c0_12 = arith.constant 0 : index
      %13 = vector.load %arg7[%c0_11, %c0_12] : memref<64x128xf32, #tpu.memory_space<vmem>>, vector<64x128xf32>
      tpu.vector_store %arg7[%c0_11, %c0_12], %12 {strides = array<i32>} : memref<64x128xf32, #tpu.memory_space<vmem>>, vector<64x128xf32>,
    } else {
    }
    %c0 = arith.constant 0 : index
    %c0_1 = arith.constant 0 : index
    %3 = vector.load %arg7[%c0, %c0_1] : memref<64x128xf32, #tpu.memory_space<vmem>>, vector<64x128xf32>
    %c0_2 = arith.constant 0 : index
    %c0_3 = arith.constant 0 : index
    %4 = vector.load %arg3[%c0_2, %c0_3] : memref<64x128xbf16, #tpu.memory_space<vmem>>, vector<64x128xbf16>
    %c0_4 = arith.constant 0 : index
    %c0_5 = arith.constant 0 : index
    %5 = vector.load %arg4[%c0_4, %c0_5] : memref<128x128xbf16, #tpu.memory_space<vmem>>, vector<128x128xbf16>
    %cst = arith.constant dense<0.000000e+00> : vector<64x128xf32>
    %6 = tpu.matmul %4, %5, %cst {dimension_numbers = #tpu.dot_dimension_numbers<[1], [0], [0], [1], [0, 0, 1, 1], [], []>} : vector<64x128xbf16>, vector<128x128xbf16>, vector<64x128xf32> -> vector<64x128xf32>
    %7 = arith.addf %3, %6 : vector<64x128xf32>
    %c0_6 = arith.constant 0 : index
    %c0_7 = arith.constant 0 : index
    %8 = vector.load %arg7[%c0_6, %c0_7] : memref<64x128xf32, #tpu.memory_space<vmem>>, vector<64x128xf32>
    tpu.vector_store %arg7[%c0_6, %c0_7], %7 {strides = array<i32>} : memref<64x128xf32, #tpu.memory_space<vmem>>, vector<64x128xf32>,
    %c0_i32_8 = arith.constant 0 : i32
    %9 = arith.cmpi eq, %arg2, %c0_i32_8 : i32
    %10 = arith.extui %9 : i1 to i32
    %c0_i32_9 = arith.constant 0 : i32
    %11 = arith.cmpi ne, %10, %c0_i32_9 : i32
    scf.if %11 {
      %c0_10 = arith.constant 0 : index
      %c0_11 = arith.constant 0 : index
      %12 = vector.load %arg7[%c0_10, %c0_11] : memref<64x128xf32, #tpu.memory_space<vmem>>, vector<64x128xf32>
      %c0_12 = arith.constant 0 : index
      %c0_13 = arith.constant 0 : index
      %13 = vector.load %arg5[%c0_12, %c0_13] : memref<1x128xf32, #tpu.memory_space<vmem>>, vector<1x128xf32>
      %14 = vector.broadcast %13 : vector<1x128xf32> to vector<64x128xf32>
      %15 = arith.addf %12, %14 : vector<64x128xf32>
      %cst_14 = arith.constant 0.000000e+00 : f32
      %16 = vector.broadcast %cst_14 : f32 to vector<64x128xf32>
      %17 = arith.maximumf %15, %16 : vector<64x128xf32>
      %18 = arith.truncf %17 : vector<64x128xf32> to vector<64x128xbf16>
      %c0_15 = arith.constant 0 : index
      %c0_16 = arith.constant 0 : index
      %19 = vector.load %arg6[%c0_15, %c0_16] : memref<64x128xbf16, #tpu.memory_space<vmem>>, vector<64x128xbf16>
      tpu.vector_store %arg6[%c0_15, %c0_16], %18 {strides = array<i32>} : memref<64x128xbf16, #tpu.memory_space<vmem>>, vector<64x128xbf16>,
    } else {
    }
    return
  }
  func.func @transform_0(%arg0: i32, %arg1: i32, %arg2: i32) -> (i32, i32) {
    %c0_i32 = arith.constant 0 : i32
    return %arg0, %arg2 : i32, i32
  }
  func.func @transform_1(%arg0: i32, %arg1: i32, %arg2: i32) -> (i32, i32) {
    %c0_i32 = arith.constant 0 : i32
    return %arg2, %arg1 : i32, i32
  }
  func.func @transform_2(%arg0: i32, %arg1: i32, %arg2: i32) -> (i32, i32) {
    %c0_i32 = arith.constant 0 : i32
    %c0_i32_0 = arith.constant 0 : i32
    return %c0_i32, %arg1 : i32, i32
  }
  func.func @transform_3(%arg0: i32, %arg1: i32, %arg2: i32) -> (i32, i32) {
    %c0_i32 = arith.constant 0 : i32
    return %arg0, %arg1 : i32, i32
  }
}

module attributes {stable_mosaic.version = 11 : i64} {
  func.func @_fused_gemm_kernel(%arg0: i32, %arg1: i32, %arg2: i32, %arg3: memref<64x128xbf16, #tpu.memory_space<vmem>>, %arg4: memref<128x128xbf16, #tpu.memory_space<vmem>>, %arg5: memref<1x128xf32, #tpu.memory_space<vmem>>, %arg6: memref<64x128xbf16, #tpu.memory_space<vmem>>, %arg7: memref<128x128xbf16, #tpu.memory_space<vmem>>, %arg8: memref<64x128xf32, #tpu.memory_space<vmem>>, %arg9: memref<64x128xf32, #tpu.memory_space<vmem>>) attributes {dimension_semantics = [#tpu.dimension_semantics<parallel>, #tpu.dimension_semantics<parallel>, #tpu.dimension_semantics<arbitrary>], iteration_bounds = array<i64: 2, 1, 1>, scalar_prefetch = 0 : i64, scratch_operands = 1 : i64, tpu.core_type = #tpu.core_type<tc>, window_params = [{transform_indices = @transform_0, window_bounds = array<i64: 64, 128>}, {transform_indices = @transform_1, window_bounds = array<i64: 128, 128>}, {transform_indices = @transform_2, window_bounds = array<i64: 1, 128>}, {transform_indices = @transform_3, window_bounds = array<i64: 64, 128>}, {transform_indices = @transform_4, window_bounds = array<i64: 128, 128>}, {transform_indices = @transform_5, window_bounds = array<i64: 64, 128>}]} {
    %c0_i32 = arith.constant 0 : i32
    %0 = arith.cmpi eq, %arg2, %c0_i32 : i32
    %1 = arith.extui %0 : i1 to i32
    %c0_i32_0 = arith.constant 0 : i32
    %2 = arith.cmpi ne, %1, %c0_i32_0 : i32
    scf.if %2 {
      %cst_10 = arith.constant 0.000000e+00 : f32
      %12 = vector.broadcast %cst_10 : f32 to vector<64x128xf32>
      %c0_11 = arith.constant 0 : index
      %c0_12 = arith.constant 0 : index
      %13 = vector.load %arg9[%c0_11, %c0_12] : memref<64x128xf32, #tpu.memory_space<vmem>>, vector<64x128xf32>
      tpu.vector_store %arg9[%c0_11, %c0_12], %12 {strides = array<i32>} : memref<64x128xf32, #tpu.memory_space<vmem>>, vector<64x128xf32>,
    } else {
    }
    %c0 = arith.constant 0 : index
    %c0_1 = arith.constant 0 : index
    %3 = vector.load %arg9[%c0, %c0_1] : memref<64x128xf32, #tpu.memory_space<vmem>>, vector<64x128xf32>
    %c0_2 = arith.constant 0 : index
    %c0_3 = arith.constant 0 : index
    %4 = vector.load %arg3[%c0_2, %c0_3] : memref<64x128xbf16, #tpu.memory_space<vmem>>, vector<64x128xbf16>
    %c0_4 = arith.constant 0 : index
    %c0_5 = arith.constant 0 : index
    %5 = vector.load %arg4[%c0_4, %c0_5] : memref<128x128xbf16, #tpu.memory_space<vmem>>, vector<128x128xbf16>
    %cst = arith.constant dense<0.000000e+00> : vector<64x128xf32>
    %6 = tpu.matmul %4, %5, %cst {dimension_numbers = #tpu.dot_dimension_numbers<[1], [0], [0], [1], [0, 0, 1, 1], [], []>} : vector<64x128xbf16>, vector<128x128xbf16>, vector<64x128xf32> -> vector<64x128xf32>
    %7 = arith.addf %3, %6 : vector<64x128xf32>
    %c0_6 = arith.constant 0 : index
    %c0_7 = arith.constant 0 : index
    %8 = vector.load %arg9[%c0_6, %c0_7] : memref<64x128xf32, #tpu.memory_space<vmem>>, vector<64x128xf32>
    tpu.vector_store %arg9[%c0_6, %c0_7], %7 {strides = array<i32>} : memref<64x128xf32, #tpu.memory_space<vmem>>, vector<64x128xf32>,
    %c0_i32_8 = arith.constant 0 : i32
    %9 = arith.cmpi eq, %arg2, %c0_i32_8 : i32
    %10 = arith.extui %9 : i1 to i32
    %c0_i32_9 = arith.constant 0 : i32
    %11 = arith.cmpi ne, %10, %c0_i32_9 : i32
    scf.if %11 {
      %c0_10 = arith.constant 0 : index
      %c0_11 = arith.constant 0 : index
      %12 = vector.load %arg9[%c0_10, %c0_11] : memref<64x128xf32, #tpu.memory_space<vmem>>, vector<64x128xf32>
      %c0_12 = arith.constant 0 : index
      %c0_13 = arith.constant 0 : index
      %13 = vector.load %arg5[%c0_12, %c0_13] : memref<1x128xf32, #tpu.memory_space<vmem>>, vector<1x128xf32>
      %14 = vector.broadcast %13 : vector<1x128xf32> to vector<64x128xf32>
      %15 = arith.addf %12, %14 : vector<64x128xf32>
      %c0_14 = arith.constant 0 : index
      %c0_15 = arith.constant 0 : index
      %16 = vector.load %arg6[%c0_14, %c0_15] : memref<64x128xbf16, #tpu.memory_space<vmem>>, vector<64x128xbf16>
      %c0_16 = arith.constant 0 : index
      %c0_17 = arith.constant 0 : index
      %17 = vector.load %arg7[%c0_16, %c0_17] : memref<128x128xbf16, #tpu.memory_space<vmem>>, vector<128x128xbf16>
      %cst_18 = arith.constant dense<0.000000e+00> : vector<64x128xf32>
      %18 = tpu.matmul %16, %17, %cst_18 {dimension_numbers = #tpu.dot_dimension_numbers<[1], [0], [0], [1], [0, 0, 1, 1], [], []>} : vector<64x128xbf16>, vector<128x128xbf16>, vector<64x128xf32> -> vector<64x128xf32>
      %19 = arith.addf %15, %18 : vector<64x128xf32>
      %cst_19 = arith.constant 0.000000e+00 : f32
      %20 = vector.broadcast %cst_19 : f32 to vector<64x128xf32>
      %21 = arith.maximumf %19, %20 : vector<64x128xf32>
      %c0_20 = arith.constant 0 : index
      %c0_21 = arith.constant 0 : index
      %22 = vector.load %arg8[%c0_20, %c0_21] : memref<64x128xf32, #tpu.memory_space<vmem>>, vector<64x128xf32>
      tpu.vector_store %arg8[%c0_20, %c0_21], %21 {strides = array<i32>} : memref<64x128xf32, #tpu.memory_space<vmem>>, vector<64x128xf32>,
    } else {
    }
    return
  }
  func.func @transform_0(%arg0: i32, %arg1: i32, %arg2: i32) -> (i32, i32) {
    %c0_i32 = arith.constant 0 : i32
    return %arg0, %arg2 : i32, i32
  }
  func.func @transform_1(%arg0: i32, %arg1: i32, %arg2: i32) -> (i32, i32) {
    %c0_i32 = arith.constant 0 : i32
    return %arg2, %arg1 : i32, i32
  }
  func.func @transform_2(%arg0: i32, %arg1: i32, %arg2: i32) -> (i32, i32) {
    %c0_i32 = arith.constant 0 : i32
    %c0_i32_0 = arith.constant 0 : i32
    return %c0_i32, %arg1 : i32, i32
  }
  func.func @transform_3(%arg0: i32, %arg1: i32, %arg2: i32) -> (i32, i32) {
    %c0_i32 = arith.constant 0 : i32
    %c0_i32_0 = arith.constant 0 : i32
    return %arg0, %c0_i32 : i32, i32
  }
  func.func @transform_4(%arg0: i32, %arg1: i32, %arg2: i32) -> (i32, i32) {
    %c0_i32 = arith.constant 0 : i32
    %c0_i32_0 = arith.constant 0 : i32
    return %c0_i32, %arg1 : i32, i32
  }
  func.func @transform_5(%arg0: i32, %arg1: i32, %arg2: i32) -> (i32, i32) {
    %c0_i32 = arith.constant 0 : i32
    return %arg0, %arg1 : i32, i32
  }
}

</mosaic_0001>

<bundles_post_ra>
// kernel: basic_block_forward.2
= control target key start
LH: loop header
LB: loop body
LE: loop exit
PB: predicated region body
PF: predicated region fallthrough
CT: control target
= control target key end

     0   :  { %s839_s12 = smov 0   ;;  %s841_s13 = smov 0   ;;  %s912_s0 = inlined_call_operand.vmem [shape: bf16[128,128], index: 0, kind: input, shape index: {}]   ;;  %s913_s1 = inlined_call_operand.vmem [shape: bf16[128,128], index: 1, kind: input, shape index: {}]   ;;  %s914_s2 = inlined_call_operand.vmem [shape: f32[1,128], index: 2, kind: input, shape index: {}]   ;;  %s915_s3 = inlined_call_operand.vmem [shape: bf16[128,128], index: 3, kind: output, shape index: {}]  }
   0x1   :  { %s843_s14 = smov 0  }
   0x2 LB: > { %s32_s15 = sadd.s32 1, %s813_s13  ;;  %p648_p0 = scmp.ge.s32.totalorder %s817_s14, 1  ;;  %s817_s14 = sphi %s843_s14, %s13_s14   ;;  %s813_s13 = sphi %s841_s13, %s917_s13   ;;  %s809_s12 = sphi %s839_s12, %s916_s12  }
   0x3   : > { %p34_p1 = scmp.ge.s32.totalorder %s32_s15, 2  ;;  %p188_p2 = scmp.lt.s32.totalorder %s817_s14, 3 }
   0x5   : > { %s919_s15 = smov (%p34_p1, %s32_s15), 0  ;;  %p189_p3 = pnand %p648_p0, %p188_p2 }
   0x6   : > { %s649_s18 = sshll.u32 (!%p189_p3), %s809_s12, 3 }
   0x7   : > { %192 = sbr.rel (%p189_p3) target bundleno = 251 (0xfb), region = 32  ;;  %p230_p4 = scmp.lt.s32.totalorder (!%p189_p3), %s649_s18, 15 }
   0xc   : > { %v783_v0 = vld [vmem:[%s913_s1 + $0x38] sm:$0xff]   ;;  %v784_v1 = vld [vmem:[%s913_s1 + $0x30] sm:$0xff]   ;;  %s921_s18 = smov (!%p230_p4, %s649_s18), 15  ;;  %v785_v2 = vld [vmem:[%s913_s1 + $0x28] sm:$0xff]  }
   0xd   : > { %719 = vmatprep.subr.bf16.mxu0 %v783_v0  ;;  %743 = vmatprep.subr.bf16.mxu1 %v783_v0  ;;  %s650_s23 = sshll.u32 %s921_s18, 2  ;;  %v786_v3 = vld [vmem:[%s913_s1 + $0x20] sm:$0xff]   ;;  %v787_v6 = vld [vmem:[%s913_s1 + $0x18] sm:$0xff]   ;;  %v788_v7 = vld [vmem:[%s913_s1 + $0x10] sm:$0xff]  }
   0xe   : > { %720 = vmatpush3.bf16.msra.mxu0 %v783_v0  ;;  %751 = vmatpush3.bf16.msra.mxu1 %v783_v0  ;;  %s874_s26 = scalar_lea.vmem %s912_s0, %s650_s23  ;;  %v789_v8 = vld [vmem:[%s913_s1 + $0x8] sm:$0xff]   ;;  %v790_v9 = vld [vmem:[%s913_s1] sm:$0xff]   ;;  %s257_s17 = scalar_lea.vmem %s915_s3, %s650_s23 }
   0xf   : > { %721 = vmatprep.subr.bf16.mxu0 %v784_v1  ;;  %744 = vmatprep.subr.bf16.mxu1 %v784_v1  ;;  %v791_v4 = vld [vmem:[%s874_s26] sm:$0xff]   ;;  %v792_v5 = vld [vmem:[%s874_s26 + $0x10] sm:$0xff]   ;;  %v793_v10 = vld [vmem:[%s874_s26 + $0x8] sm:$0xff]  }
  0x10   : > { %735 = vmatprep.mubr.bf16.mxu0 %v791_v4  ;;  %739 = vmatprep.mubr.bf16.mxu1 %v792_v5  ;;  %v794_v11 = vld [vmem:[%s874_s26 + $0x18] sm:$0xff]   ;;  %v665_v12 = vld [vmem:[%s914_s2] ss:$0 sm:$0xff] }
  0x12   : > { %722 = vmatpush3.bf16.msra.mxu0 %v784_v1  ;;  %752 = vmatpush3.bf16.msra.mxu1 %v784_v1 }
  0x13   : > { %723 = vmatprep.subr.bf16.mxu0 %v785_v2  ;;  %745 = vmatprep.subr.bf16.mxu1 %v785_v2 }
  0x16   : > { %724 = vmatpush3.bf16.msra.mxu0 %v785_v2  ;;  %753 = vmatpush3.bf16.msra.mxu1 %v785_v2 }
  0x17   : > { %725 = vmatprep.subr.bf16.mxu0 %v786_v3  ;;  %746 = vmatprep.subr.bf16.mxu1 %v786_v3 }
  0x1a   : > { %726 = vmatpush3.bf16.msra.mxu0 %v786_v3  ;;  %754 = vmatpush3.bf16.msra.mxu1 %v786_v3 }
  0x1b   : > { %727 = vmatprep.subr.bf16.mxu0 %v787_v6  ;;  %747 = vmatprep.subr.bf16.mxu1 %v787_v6 }
  0x1e   : > { %728 = vmatpush3.bf16.msra.mxu0 %v787_v6  ;;  %755 = vmatpush3.bf16.msra.mxu1 %v787_v6 }
  0x1f   : > { %729 = vmatprep.subr.bf16.mxu0 %v788_v7  ;;  %748 = vmatprep.subr.bf16.mxu1 %v788_v7 }
  0x22   : > { %730 = vmatpush3.bf16.msra.mxu0 %v788_v7  ;;  %756 = vmatpush3.bf16.msra.mxu1 %v788_v7 }
  0x23   : > { %731 = vmatprep.subr.bf16.mxu0 %v789_v8  ;;  %749 = vmatprep.subr.bf16.mxu1 %v789_v8 }
  0x26   : > { %732 = vmatpush3.bf16.msra.mxu0 %v789_v8  ;;  %757 = vmatpush3.bf16.msra.mxu1 %v789_v8 }
  0x27   : > { %733 = vmatprep.subr.bf16.mxu0 %v790_v9  ;;  %750 = vmatprep.subr.bf16.mxu1 %v790_v9 }
  0x2a   : > { %734 = vmatpush3.bf16.msra.mxu0 %v790_v9  ;;  %758 = vmatpush3.bf16.msra.mxu1 %v790_v9 }
  0x2d   : > { %736 = vmatmul.mubr.bf16.vlgmr.msra.gmra.mxu0 %v793_v10  ;;  %740 = vmatmul.mubr.bf16.vlgmr.msra.gmra.mxu1 %v794_v11 }
  0xed   : > { %v737_v13 = vpop.f32.mrf.mxu0  ;;  %v741_v14 = vpop.f32.mrf.mxu1 }
  0xee   : > { %v477_v15 = vadd.f32 %v737_v13, %v665_v12  ;;  %v481_v16 = vadd.f32 %v741_v14, %v665_v12 }
  0xef   : > { %v410_v17 = vpop.f32.mrf.mxu0  ;;  %v426_v18 = vpop.f32.mrf.mxu1 }
  0xf0   : > { %v475_v19 = vadd.f32 %v665_v12, %v410_v17  ;;  %v479_v20 = vadd.f32 %v665_v12, %v426_v18  ;;  %v485_v25 = vmax.f32 %v477_v15, 0.0  ;;  %v489_v26 = vmax.f32 %v481_v16, 0.0 }
  0xf1   : > { %v738_v21 = vpop.f32.mrf.mxu0  ;;  %v742_v22 = vpop.f32.mrf.mxu1 }
  0xf2   : > { %v478_v23 = vadd.f32 %v738_v21, %v665_v12  ;;  %v482_v24 = vadd.f32 %v742_v22, %v665_v12  ;;  %v483_v33 = vmax.f32 %v475_v19, 0.0  ;;  %v487_v34 = vmax.f32 %v479_v20, 0.0 }
  0xf3   : > { %v413_v27 = vpop.f32.mrf.mxu0  ;;  %v429_v28 = vpop.f32.mrf.mxu1 }
  0xf4   : > { %v486_v29 = vmax.f32 %v478_v23, 0.0  ;;  %v490_v30 = vmax.f32 %v482_v24, 0.0  ;;  %v476_v31 = vadd.f32 %v665_v12, %v413_v27  ;;  %v480_v32 = vadd.f32 %v665_v12, %v429_v28 }
  0xf6   : > { %v692_v35 = vpack.c.bf16 %v486_v29, %v485_v25  ;;  %v702_v36 = vpack.c.bf16 %v490_v30, %v489_v26  ;;  %v484_v37 = vmax.f32 %v476_v31, 0.0  ;;  %v488_v38 = vmax.f32 %v480_v32, 0.0 }
  0xf8   : > { %704 = vst [vmem:[%s257_s17 + $0x8] sm:$0xff] %v692_v35   ;;  %706 = vst [vmem:[%s257_s17 + $0x18] sm:$0xff] %v702_v36   ;;  %v687_v39 = vpack.c.bf16 %v484_v37, %v483_v33  ;;  %v697_v40 = vpack.c.bf16 %v488_v38, %v487_v34 }
  0xfa   : > { %688 = vst [vmem:[%s257_s17] sm:$0xff] %v687_v39   ;;  %705 = vst [vmem:[%s257_s17 + $0x10] sm:$0xff] %v697_v40  }
  0xfb PF: > { %s13_s14 = sadd.s32 1, %s817_s14   ;;  %s916_s12 = smov %s813_s13 }
  0xfc   : > { %p10_p5 = scmp.ge.s32.totalorder %s13_s14, 4   ;;  %s917_s13 = smov %s919_s15 }
  0xfe   :  { %12 = sbr.rel (!%p10_p5) target bundleno = 2 (0x2), region = 76 }

// kernel: basic_block_forward.3
= control target key start
LH: loop header
LB: loop body
LE: loop exit
PB: predicated region body
PF: predicated region fallthrough
CT: control target
= control target key end

     0   :  { %s1114_s18 = smov 0   ;;  %s1116_s19 = smov 0   ;;  %s1227_s0 = inlined_call_operand.vmem [shape: bf16[128,128], index: 0, kind: input, shape index: {}]   ;;  %s1228_s1 = inlined_call_operand.vmem [shape: bf16[128,128], index: 1, kind: input, shape index: {}]   ;;  %s1229_s2 = inlined_call_operand.vmem [shape: f32[1,128], index: 2, kind: input, shape index: {}]   ;;  %s1230_s3 = inlined_call_operand.vmem [shape: bf16[128,128], index: 3, kind: input, shape index: {}]   ;;  %s1231_s4 = inlined_call_operand.vmem [shape: bf16[128,128], index: 4, kind: input, shape index: {}]   ;;  %s1232_s5 = inlined_call_operand.vmem [shape: f32[128,128], index: 5, kind: output, shape index: {}]  }
   0x1   :  { %s1118_s20 = smov 0  }
   0x2 LB: > { %s34_s21 = sadd.s32 1, %s1078_s19  ;;  %p906_p0 = scmp.ge.s32.totalorder %s1082_s20, 1  ;;  %s1082_s20 = sphi %s1118_s20, %s15_s20   ;;  %s1078_s19 = sphi %s1116_s19, %s1234_s19   ;;  %s1074_s18 = sphi %s1114_s18, %s1233_s18  }
   0x3   : > { %p36_p1 = scmp.ge.s32.totalorder %s34_s21, 2  ;;  %p258_p2 = scmp.lt.s32.totalorder %s1082_s20, 3 }
   0x5   : > { %s1236_s21 = smov (%p36_p1, %s34_s21), 0  ;;  %p259_p3 = pnand %p906_p0, %p258_p2 }
   0x6   : > { %s907_s24 = sshll.u32 (!%p259_p3), %s1074_s18, 3 }
   0x7   : > { %262 = sbr.rel (%p259_p3) target bundleno = 259 (0x103), region = 40  ;;  %p313_p4 = scmp.lt.s32.totalorder (!%p259_p3), %s907_s24, 15 }
   0xc   : > { %v1036_v0 = vld [vmem:[%s1228_s1 + $0x38] sm:$0xff]   ;;  %v1038_v2 = vld [vmem:[%s1228_s1 + $0x30] sm:$0xff]   ;;  %v1040_v4 = vld [vmem:[%s1228_s1 + $0x28] sm:$0xff]   ;;  %s1238_s24 = smov (!%p313_p4, %s907_s24), 15 }
   0xd   : > { %v1037_v1 = vld [vmem:[%s1231_s4 + $0x38] sm:$0xff]   ;;  %964 = vmatprep.subr.bf16.mxu0 %v1036_v0  ;;  %v1039_v3 = vld [vmem:[%s1231_s4 + $0x30] sm:$0xff]   ;;  %v1041_v5 = vld [vmem:[%s1231_s4 + $0x28] sm:$0xff]   ;;  %s908_s14 = sshll.u32 %s1238_s24, 2  ;;  %s912_s18 = sshll.u32 %s1238_s24, 3 }
   0xe   : > { %988 = vmatprep.subr.bf16.mxu1 %v1037_v1  ;;  %965 = vmatpush3.bf16.msra.mxu0 %v1036_v0  ;;  %v1042_v6 = vld [vmem:[%s1228_s1 + $0x20] sm:$0xff]   ;;  %v1044_v8 = vld [vmem:[%s1228_s1 + $0x18] sm:$0xff]   ;;  %s1168_s25 = scalar_lea.vmem %s1227_s0, %s908_s14  ;;  %v1046_v10 = vld [vmem:[%s1228_s1 + $0x10] sm:$0xff]   ;;  %s1176_s30 = scalar_lea.vmem %s1230_s3, %s908_s14 }
   0xf   : > { %989 = vmatpush3.bf16.msra.mxu1 %v1037_v1  ;;  %966 = vmatprep.subr.bf16.mxu0 %v1038_v2  ;;  %v1043_v7 = vld [vmem:[%s1231_s4 + $0x20] sm:$0xff]   ;;  %v1045_v9 = vld [vmem:[%s1231_s4 + $0x18] sm:$0xff]   ;;  %v1047_v11 = vld [vmem:[%s1231_s4 + $0x10] sm:$0xff]   ;;  %s1208_s26 = scalar_lea.vmem %s1232_s5, %s912_s18 }
  0x10   : > { %990 = vmatprep.subr.bf16.mxu1 %v1039_v3  ;;  %v1052_v12 = vld [vmem:[%s1168_s25] sm:$0xff]   ;;  %v1048_v14 = vld [vmem:[%s1228_s1 + $0x8] sm:$0xff]   ;;  %v1056_v20 = vld [vmem:[%s1168_s25 + $0x10] sm:$0xff]  }
  0x11   : > { %v1053_v13 = vld [vmem:[%s1176_s30] sm:$0xff]   ;;  %980 = vmatprep.mubr.bf16.mxu0 %v1052_v12  ;;  %v1049_v15 = vld [vmem:[%s1231_s4 + $0x8] sm:$0xff]   ;;  %v1057_v21 = vld [vmem:[%s1176_s30 + $0x10] sm:$0xff]  }
  0x12   : > { %967 = vmatpush3.bf16.msra.mxu0 %v1038_v2  ;;  %1004 = vmatprep.mubr.bf16.mxu1 %v1053_v13  ;;  %v1050_v16 = vld [vmem:[%s1228_s1] sm:$0xff]   ;;  %v1054_v18 = vld [vmem:[%s1168_s25 + $0x8] sm:$0xff]   ;;  %v1058_v22 = vld [vmem:[%s1168_s25 + $0x18] sm:$0xff]  }
  0x13   : > { %991 = vmatpush3.bf16.msra.mxu1 %v1039_v3  ;;  %968 = vmatprep.subr.bf16.mxu0 %v1040_v4  ;;  %v1051_v17 = vld [vmem:[%s1231_s4] sm:$0xff]   ;;  %v1055_v19 = vld [vmem:[%s1176_s30 + $0x8] sm:$0xff]   ;;  %v1059_v23 = vld [vmem:[%s1176_s30 + $0x18] sm:$0xff]  }
  0x14   : > { %992 = vmatprep.subr.bf16.mxu1 %v1041_v5  ;;  %v925_v24 = vld [vmem:[%s1229_s2] ss:$0 sm:$0xff] }
  0x16   : > { %969 = vmatpush3.bf16.msra.mxu0 %v1040_v4 }
  0x17   : > { %993 = vmatpush3.bf16.msra.mxu1 %v1041_v5  ;;  %970 = vmatprep.subr.bf16.mxu0 %v1042_v6 }
  0x18   : > { %994 = vmatprep.subr.bf16.mxu1 %v1043_v7 }
  0x1a   : > { %971 = vmatpush3.bf16.msra.mxu0 %v1042_v6 }
  0x1b   : > { %995 = vmatpush3.bf16.msra.mxu1 %v1043_v7  ;;  %972 = vmatprep.subr.bf16.mxu0 %v1044_v8 }
  0x1c   : > { %996 = vmatprep.subr.bf16.mxu1 %v1045_v9 }
  0x1e   : > { %973 = vmatpush3.bf16.msra.mxu0 %v1044_v8 }
  0x1f   : > { %997 = vmatpush3.bf16.msra.mxu1 %v1045_v9  ;;  %974 = vmatprep.subr.bf16.mxu0 %v1046_v10 }
  0x20   : > { %998 = vmatprep.subr.bf16.mxu1 %v1047_v11 }
  0x22   : > { %975 = vmatpush3.bf16.msra.mxu0 %v1046_v10 }
  0x23   : > { %999 = vmatpush3.bf16.msra.mxu1 %v1047_v11  ;;  %976 = vmatprep.subr.bf16.mxu0 %v1048_v14 }
  0x24   : > { %1000 = vmatprep.subr.bf16.mxu1 %v1049_v15 }
  0x26   : > { %977 = vmatpush3.bf16.msra.mxu0 %v1048_v14 }
  0x27   : > { %1001 = vmatpush3.bf16.msra.mxu1 %v1049_v15  ;;  %978 = vmatprep.subr.bf16.mxu0 %v1050_v16 }
  0x28   : > { %1002 = vmatprep.subr.bf16.mxu1 %v1051_v17 }
  0x2a   : > { %979 = vmatpush3.bf16.msra.mxu0 %v1050_v16 }
  0x2b   : > { %1003 = vmatpush3.bf16.msra.mxu1 %v1051_v17 }
  0x2d   : > { %981 = vmatmul.mubr.bf16.vlgmr.msra.gmra.mxu0 %v1054_v18 }
  0x2e   : > { %1005 = vmatmul.mubr.bf16.vlgmr.msra.gmra.mxu1 %v1055_v19  ;;  %984 = vmatprep.mubr.bf16.mxu0 %v1056_v20 }
  0x2f   : > { %1008 = vmatprep.mubr.bf16.mxu1 %v1057_v21 }
  0x35   : > { %985 = vmatmul.mubr.bf16.gmra.mxu0 %v1058_v22 }
  0x36   : > { %1009 = vmatmul.mubr.bf16.gmra.mxu1 %v1059_v23 }
  0xed   : > { %v982_v25 = vpop.f32.mrf.mxu0 }
  0xee   : > { %v570_v26 = vadd.f32 %v982_v25, %v925_v24  ;;  %v1006_v27 = vpop.f32.mrf.mxu1 }
  0xef   : > { %v503_v28 = vpop.f32.mrf.mxu0 }
  0xf0   : > { %v739_v29 = vadd.f32 %v1006_v27, %v570_v26  ;;  %v568_v30 = vadd.f32 %v925_v24, %v503_v28  ;;  %v706_v31 = vpop.f32.mrf.mxu1 }
  0xf1   : > { %v983_v32 = vpop.f32.mrf.mxu0 }
  0xf2   : > { %v747_v33 = vmax.f32 %v739_v29, 0.0  ;;  %v737_v34 = vadd.f32 %v706_v31, %v568_v30  ;;  %v571_v35 = vadd.f32 %v983_v32, %v925_v24  ;;  %v1007_v36 = vpop.f32.mrf.mxu1 }
  0xf3   : > { %v506_v37 = vpop.f32.mrf.mxu0 }
  0xf4   : > { %755 = vst [vmem:[%s1208_s26 + $0x10] sm:$0xff] %v747_v33  ;;  %v745_v38 = vmax.f32 %v737_v34, 0.0  ;;  %v740_v39 = vadd.f32 %v1007_v36, %v571_v35  ;;  %v569_v40 = vadd.f32 %v925_v24, %v506_v37  ;;  %v709_v41 = vpop.f32.mrf.mxu1 }
  0xf5   : > { %v986_v42 = vpop.f32.mrf.mxu0 }
  0xf6   : > { %753 = vst [vmem:[%s1208_s26] sm:$0xff] %v745_v38  ;;  %v748_v43 = vmax.f32 %v740_v39, 0.0  ;;  %v738_v44 = vadd.f32 %v709_v41, %v569_v40  ;;  %v574_v45 = vadd.f32 %v986_v42, %v925_v24  ;;  %v1010_v46 = vpop.f32.mrf.mxu1 }
  0xf7   : > { %v519_v47 = vpop.f32.mrf.mxu0 }
  0xf8   : > { %756 = vst [vmem:[%s1208_s26 + $0x18] sm:$0xff] %v748_v43  ;;  %v746_v48 = vmax.f32 %v738_v44, 0.0  ;;  %v743_v49 = vadd.f32 %v1010_v46, %v574_v45  ;;  %v572_v50 = vadd.f32 %v925_v24, %v519_v47  ;;  %v722_v51 = vpop.f32.mrf.mxu1 }
  0xf9   : > { %v987_v52 = vpop.f32.mrf.mxu0 }
  0xfa   : > { %754 = vst [vmem:[%s1208_s26 + $0x8] sm:$0xff] %v746_v48  ;;  %v751_v53 = vmax.f32 %v743_v49, 0.0  ;;  %v741_v54 = vadd.f32 %v722_v51, %v572_v50  ;;  %v575_v55 = vadd.f32 %v987_v52, %v925_v24  ;;  %v1011_v56 = vpop.f32.mrf.mxu1 }
  0xfb   : > { %v522_v57 = vpop.f32.mrf.mxu0 }
  0xfc   : > { %759 = vst [vmem:[%s1208_s26 + $0x30] sm:$0xff] %v751_v53  ;;  %v749_v58 = vmax.f32 %v741_v54, 0.0  ;;  %v744_v59 = vadd.f32 %v1011_v56, %v575_v55  ;;  %v573_v60 = vadd.f32 %v925_v24, %v522_v57  ;;  %v725_v61 = vpop.f32.mrf.mxu1 }
  0xfe   : > { %757 = vst [vmem:[%s1208_s26 + $0x20] sm:$0xff] %v749_v58  ;;  %v752_v62 = vmax.f32 %v744_v59, 0.0  ;;  %v742_v63 = vadd.f32 %v725_v61, %v573_v60 }
 0x100   : > { %760 = vst [vmem:[%s1208_s26 + $0x38] sm:$0xff] %v752_v62  ;;  %v750_v0 = vmax.f32 %v742_v63, 0.0 }
 0x102   : > { %758 = vst [vmem:[%s1208_s26 + $0x28] sm:$0xff] %v750_v0 }
 0x103 PF: > { %s15_s20 = sadd.s32 1, %s1082_s20   ;;  %s1233_s18 = smov %s1078_s19 }
 0x104   : > { %p12_p5 = scmp.ge.s32.totalorder %s15_s20, 4   ;;  %s1234_s19 = smov %s1236_s21 }
 0x106   :  { %14 = sbr.rel (!%p12_p5) target bundleno = 2 (0x2), region = 90 }

</bundles_post_ra>
